<compile_context>
chip_gen: v7x
topology: tpu7x:2x2x1
jax: 0.10.0
libtpu: 0.0.40
codegen_flags: <defaults>
</compile_context>

<pallas_src>
import functools

import jax
import jax.numpy as jnp
from jax.experimental import pallas as pl
from jax.experimental.pallas import tpu as pltpu


def _round_up(x, m):
    return ((x + m - 1) // m) * m


def classify_layers_kernel(x_ref, w1_ref, b1_ref, w2_ref, b2_ref, w3_ref, b3_ref, o_ref):
    """Fused MLP: relu(x@W1+b1) -> relu(.@W2+b2) -> .@W3+b3 for one batch tile.

    x / W* are bf16; accumulation, bias add and ReLU are f32; activations are
    re-cast to bf16 between matmuls to keep the MXU in its fast path.
    """
    x = x_ref[...]  # (bt, in_p) bf16

    h1 = jnp.dot(x, w1_ref[...], preferred_element_type=jnp.float32) + b1_ref[...]
    h1 = jnp.maximum(h1, 0.0).astype(jnp.bfloat16)
    # TODO(synk): nn.Dropout(0.25) in train mode has no deterministic Pallas equivalent
    # matching torch RNG; eval-mode forward (identity) is implemented here.

    h2 = jnp.dot(h1, w2_ref[...], preferred_element_type=jnp.float32) + b2_ref[...]
    h2 = jnp.maximum(h2, 0.0).astype(jnp.bfloat16)

    out = jnp.dot(h2, w3_ref[...], preferred_element_type=jnp.float32) + b3_ref[...]
    o_ref[...] = out.astype(o_ref.dtype)  # lane-dense (bt, 128*k) store


@functools.partial(jax.jit, static_argnames=("batch_tile",))
def classify_layers(x, w1, b1, w2, b2, w3, b3, *, batch_tile=128):
    B, in_ch = x.shape
    m1 = w1.shape[1]
    m2 = w2.shape[1]
    n_classes = w3.shape[1]
    out_dtype = x.dtype

    # --- padded / tiled geometry (all static) ---------------------------------
    # Batch tile: multiple of 16 (bf16 sublane packing); for small B run the whole
    # (padded) batch in one grid step.
    bt = min(batch_tile, _round_up(B, 16))
    bt = _round_up(bt, 16)
    B_p = _round_up(B, bt)
    # Feature dims padded to the 128-lane width -> dense vregs and unmasked stores.
    in_p = _round_up(in_ch, 128)
    m1_p = _round_up(m1, 128)
    m2_p = _round_up(m2, 128)
    nc_p = _round_up(n_classes, 128)
    grid = (B_p // bt,)

    def pad2(a, rows, cols, dtype):
        return jnp.pad(a.astype(dtype), ((0, rows - a.shape[0]), (0, cols - a.shape[1])))

    # bf16 activations/weights, f32 biases (added to the f32 accumulator).
    x_p = pad2(x, B_p, in_p, jnp.bfloat16)
    w1_p = pad2(w1, in_p, m1_p, jnp.bfloat16)
    w2_p = pad2(w2, m1_p, m2_p, jnp.bfloat16)
    w3_p = pad2(w3, m2_p, nc_p, jnp.bfloat16)
    b1_p = pad2(b1, 1, m1_p, jnp.float32)
    b2_p = pad2(b2, 1, m2_p, jnp.float32)
    b3_p = pad2(b3, 1, nc_p, jnp.float32)

    # --- VMEM budget (per review: make it explicit, esp. for v7x 64 MiB/TC) ----
    vmem_est = (
        2 * bt * in_p * 2                       # x tile, double-buffered, bf16
        + 2 * bt * nc_p * 4                     # out tile, double-buffered, f32
        + 2 * (in_p * m1_p + m1_p * m2_p + m2_p * nc_p) * 2   # weights (bf16)
        + 2 * (m1_p + m2_p + nc_p) * 4          # biases (f32)
        + bt * (m1_p + m2_p + nc_p) * 4         # f32 intermediates
    )
    vmem_limit = int(min(max(2 * vmem_est, 32 * 1024 * 1024), 100 * 1024 * 1024))

    flops = 2 * B_p * (in_p * m1_p + m1_p * m2_p + m2_p * nc_p)
    bytes_accessed = (
        (B_p * in_p + in_p * m1_p + m1_p * m2_p + m2_p * nc_p) * 2
        + (m1_p + m2_p + nc_p) * 4
        + B_p * nc_p * 4
    )

    # Batch tiled across the grid; weights/biases are grid-constant blocks.
    in_specs = [
        pl.BlockSpec((bt, in_p), lambda i: (i, 0)),       # x tile
        pl.BlockSpec((in_p, m1_p), lambda i: (0, 0)),     # W1
        pl.BlockSpec((1, m1_p), lambda i: (0, 0)),        # b1
        pl.BlockSpec((m1_p, m2_p), lambda i: (0, 0)),     # W2
        pl.BlockSpec((1, m2_p), lambda i: (0, 0)),        # b2
        pl.BlockSpec((m2_p, nc_p), lambda i: (0, 0)),     # W3
        pl.BlockSpec((1, nc_p), lambda i: (0, 0)),        # b3
    ]
    out_specs = pl.BlockSpec((bt, nc_p), lambda i: (i, 0))

    out_p = pl.pallas_call(
        classify_layers_kernel,
        out_shape=jax.ShapeDtypeStruct((B_p, nc_p), out_dtype),
        grid_spec=pltpu.PrefetchScalarGridSpec(
            num_scalar_prefetch=0,
            grid=grid,
            in_specs=in_specs,
            out_specs=out_specs,
        ),
        compiler_params=pltpu.CompilerParams(
            dimension_semantics=("parallel",),
            vmem_limit_bytes=vmem_limit,
        ),
        cost_estimate=pl.CostEstimate(
            flops=flops, transcendentals=0, bytes_accessed=bytes_accessed
        ),
    )(x_p, w1_p, b1_p, w2_p, b2_p, w3_p, b3_p)

    # Slice the zero-padding back off.
    return out_p[:B, :n_classes]


def init_linear_params(key, fan_in, fan_out, dtype=jnp.float32):
    """Deterministic init mimicking PyTorch nn.Linear default (uniform +/- 1/sqrt(fan_in)).
    Weight is returned already transposed to (fan_in, fan_out)."""
    kw, kb = jax.random.split(key)
    bound = 1.0 / jnp.sqrt(fan_in)
    w = jax.random.uniform(kw, (fan_in, fan_out), dtype, minval=-bound, maxval=bound)
    b = jax.random.uniform(kb, (1, fan_out), dtype, minval=-bound, maxval=bound)
    return w, b


if __name__ == "__main__":
    # Small shapes consistent with the module's forward: x is (batch, in_channels).
    batch = 16
    in_channels = 32
    mid_channels1 = 64
    mid_channels2 = 32
    n_classes = 10

    root = jax.random.PRNGKey(0)
    kx, k1, k2, k3 = jax.random.split(root, 4)

    x = jax.random.normal(kx, (batch, in_channels), dtype=jnp.float32)
    w1, b1 = init_linear_params(k1, in_channels, mid_channels1)
    w2, b2 = init_linear_params(k2, mid_channels1, mid_channels2)
    w3, b3 = init_linear_params(k3, mid_channels2, n_classes)

    out = classify_layers(x, w1, b1, w2, b2, w3, b3)
    out = jax.block_until_ready(out)
    assert out.shape == (batch, n_classes)

    # Reference 1: same bf16-quantized math as the kernel (tight tolerance).
    bf = jnp.bfloat16
    r = jnp.maximum(jnp.dot(x.astype(bf), w1.astype(bf),
                            preferred_element_type=jnp.float32) + b1, 0.0)
    r = jnp.maximum(jnp.dot(r.astype(bf), w2.astype(bf),
                            preferred_element_type=jnp.float32) + b2, 0.0)
    ref_bf16 = jnp.dot(r.astype(bf), w3.astype(bf),
                       preferred_element_type=jnp.float32) + b3
    assert jnp.allclose(out, ref_bf16, atol=2e-3, rtol=2e-3)

    # Reference 2: full f32 math (loose tolerance, accounts for bf16 quantization).
    ref_f32 = jnp.maximum(x @ w1 + b1, 0.0)
    ref_f32 = jnp.maximum(ref_f32 @ w2 + b2, 0.0)
    ref_f32 = ref_f32 @ w3 + b3
    assert jnp.allclose(out, ref_f32, atol=6e-2, rtol=6e-2)

    print("KERNEL_OK")
</pallas_src>

<mosaic_0001>
module attributes {stable_mosaic.version = 11 : i64} {
  func.func @classify_layers_kernel(%arg0: i32, %arg1: memref<16x128xbf16, #tpu.memory_space<vmem>>, %arg2: memref<128x128xbf16, #tpu.memory_space<vmem>>, %arg3: memref<1x128xf32, #tpu.memory_space<vmem>>, %arg4: memref<128x128xbf16, #tpu.memory_space<vmem>>, %arg5: memref<1x128xf32, #tpu.memory_space<vmem>>, %arg6: memref<128x128xbf16, #tpu.memory_space<vmem>>, %arg7: memref<1x128xf32, #tpu.memory_space<vmem>>, %arg8: memref<16x128xf32, #tpu.memory_space<vmem>>) attributes {dimension_semantics = [#tpu.dimension_semantics<parallel>], iteration_bounds = array<i64: 1>, scalar_prefetch = 0 : i64, scratch_operands = 0 : i64, tpu.core_type = #tpu.core_type<tc>, window_params = [{transform_indices = @transform_0, window_bounds = array<i64: 16, 128>}, {pipeline_mode = #tpu.pipeline_mode<synchronous>, transform_indices = @transform_1, window_bounds = array<i64: 128, 128>}, {pipeline_mode = #tpu.pipeline_mode<synchronous>, transform_indices = @transform_2, window_bounds = array<i64: 1, 128>}, {pipeline_mode = #tpu.pipeline_mode<synchronous>, transform_indices = @transform_3, window_bounds = array<i64: 128, 128>}, {pipeline_mode = #tpu.pipeline_mode<synchronous>, transform_indices = @transform_4, window_bounds = array<i64: 1, 128>}, {pipeline_mode = #tpu.pipeline_mode<synchronous>, transform_indices = @transform_5, window_bounds = array<i64: 128, 128>}, {pipeline_mode = #tpu.pipeline_mode<synchronous>, transform_indices = @transform_6, window_bounds = array<i64: 1, 128>}, {transform_indices = @transform_7, window_bounds = array<i64: 16, 128>}]} {
    %c0 = arith.constant 0 : index
    %c0_0 = arith.constant 0 : index
    %0 = vector.load %arg1[%c0, %c0_0] : memref<16x128xbf16, #tpu.memory_space<vmem>>, vector<16x128xbf16>
    %c0_1 = arith.constant 0 : index
    %c0_2 = arith.constant 0 : index
    %1 = vector.load %arg2[%c0_1, %c0_2] : memref<128x128xbf16, #tpu.memory_space<vmem>>, vector<128x128xbf16>
    %cst = arith.constant dense<0.000000e+00> : vector<16x128xf32>
    %2 = tpu.matmul %0, %1, %cst {dimension_numbers = #tpu.dot_dimension_numbers<[1], [0], [0], [1], [0, 0, 1, 1], [], []>} : vector<16x128xbf16>, vector<128x128xbf16>, vector<16x128xf32> -> vector<16x128xf32>
    %c0_3 = arith.constant 0 : index
    %c0_4 = arith.constant 0 : index
    %3 = vector.load %arg3[%c0_3, %c0_4] : memref<1x128xf32, #tpu.memory_space<vmem>>, vector<1x128xf32>
    %4 = vector.broadcast %3 : vector<1x128xf32> to vector<16x128xf32>
    %5 = arith.addf %2, %4 : vector<16x128xf32>
    %cst_5 = arith.constant 0.000000e+00 : f32
    %6 = vector.broadcast %cst_5 : f32 to vector<16x128xf32>
    %7 = arith.maximumf %5, %6 : vector<16x128xf32>
    %8 = arith.truncf %7 : vector<16x128xf32> to vector<16x128xbf16>
    %c0_6 = arith.constant 0 : index
    %c0_7 = arith.constant 0 : index
    %9 = vector.load %arg4[%c0_6, %c0_7] : memref<128x128xbf16, #tpu.memory_space<vmem>>, vector<128x128xbf16>
    %cst_8 = arith.constant dense<0.000000e+00> : vector<16x128xf32>
    %10 = tpu.matmul %8, %9, %cst_8 {dimension_numbers = #tpu.dot_dimension_numbers<[1], [0], [0], [1], [0, 0, 1, 1], [], []>} : vector<16x128xbf16>, vector<128x128xbf16>, vector<16x128xf32> -> vector<16x128xf32>
    %c0_9 = arith.constant 0 : index
    %c0_10 = arith.constant 0 : index
    %11 = vector.load %arg5[%c0_9, %c0_10] : memref<1x128xf32, #tpu.memory_space<vmem>>, vector<1x128xf32>
    %12 = vector.broadcast %11 : vector<1x128xf32> to vector<16x128xf32>
    %13 = arith.addf %10, %12 : vector<16x128xf32>
    %cst_11 = arith.constant 0.000000e+00 : f32
    %14 = vector.broadcast %cst_11 : f32 to vector<16x128xf32>
    %15 = arith.maximumf %13, %14 : vector<16x128xf32>
    %16 = arith.truncf %15 : vector<16x128xf32> to vector<16x128xbf16>
    %c0_12 = arith.constant 0 : index
    %c0_13 = arith.constant 0 : index
    %17 = vector.load %arg6[%c0_12, %c0_13] : memref<128x128xbf16, #tpu.memory_space<vmem>>, vector<128x128xbf16>
    %cst_14 = arith.constant dense<0.000000e+00> : vector<16x128xf32>
    %18 = tpu.matmul %16, %17, %cst_14 {dimension_numbers = #tpu.dot_dimension_numbers<[1], [0], [0], [1], [0, 0, 1, 1], [], []>} : vector<16x128xbf16>, vector<128x128xbf16>, vector<16x128xf32> -> vector<16x128xf32>
    %c0_15 = arith.constant 0 : index
    %c0_16 = arith.constant 0 : index
    %19 = vector.load %arg7[%c0_15, %c0_16] : memref<1x128xf32, #tpu.memory_space<vmem>>, vector<1x128xf32>
    %20 = vector.broadcast %19 : vector<1x128xf32> to vector<16x128xf32>
    %21 = arith.addf %18, %20 : vector<16x128xf32>
    %c0_17 = arith.constant 0 : index
    %c0_18 = arith.constant 0 : index
    %22 = vector.load %arg8[%c0_17, %c0_18] : memref<16x128xf32, #tpu.memory_space<vmem>>, vector<16x128xf32>
    tpu.vector_store %arg8[%c0_17, %c0_18], %21 {strides = array<i32>} : memref<16x128xf32, #tpu.memory_space<vmem>>, vector<16x128xf32>,
    return
  }
  func.func @transform_0(%arg0: i32) -> (i32, i32) {
    %c0_i32 = arith.constant 0 : i32
    %c0_i32_0 = arith.constant 0 : i32
    return %arg0, %c0_i32 : i32, i32
  }
  func.func @transform_1(%arg0: i32) -> (i32, i32) {
    %c0_i32 = arith.constant 0 : i32
    %c0_i32_0 = arith.constant 0 : i32
    %c0_i32_1 = arith.constant 0 : i32
    return %c0_i32, %c0_i32_0 : i32, i32
  }
  func.func @transform_2(%arg0: i32) -> (i32, i32) {
    %c0_i32 = arith.constant 0 : i32
    %c0_i32_0 = arith.constant 0 : i32
    %c0_i32_1 = arith.constant 0 : i32
    return %c0_i32, %c0_i32_0 : i32, i32
  }
  func.func @transform_3(%arg0: i32) -> (i32, i32) {
    %c0_i32 = arith.constant 0 : i32
    %c0_i32_0 = arith.constant 0 : i32
    %c0_i32_1 = arith.constant 0 : i32
    return %c0_i32, %c0_i32_0 : i32, i32
  }
  func.func @transform_4(%arg0: i32) -> (i32, i32) {
    %c0_i32 = arith.constant 0 : i32
    %c0_i32_0 = arith.constant 0 : i32
    %c0_i32_1 = arith.constant 0 : i32
    return %c0_i32, %c0_i32_0 : i32, i32
  }
  func.func @transform_5(%arg0: i32) -> (i32, i32) {
    %c0_i32 = arith.constant 0 : i32
    %c0_i32_0 = arith.constant 0 : i32
    %c0_i32_1 = arith.constant 0 : i32
    return %c0_i32, %c0_i32_0 : i32, i32
  }
  func.func @transform_6(%arg0: i32) -> (i32, i32) {
    %c0_i32 = arith.constant 0 : i32
    %c0_i32_0 = arith.constant 0 : i32
    %c0_i32_1 = arith.constant 0 : i32
    return %c0_i32, %c0_i32_0 : i32, i32
  }
  func.func @transform_7(%arg0: i32) -> (i32, i32) {
    %c0_i32 = arith.constant 0 : i32
    %c0_i32_0 = arith.constant 0 : i32
    return %arg0, %c0_i32 : i32, i32
  }
}

</mosaic_0001>

<bundles_post_ra>
// kernel: classify_layers.1
= control target key start
LH: loop header
LB: loop body
LE: loop exit
PB: predicated region body
PF: predicated region fallthrough
CT: control target
= control target key end

     0   :  { %v565_v1 = vmov 0.0   ;;  %vm566_vm0 = vmmov 0   ;;  %s736_s0 = inlined_call_operand.vmem [shape: bf16[16,128], index: 0, kind: input, shape index: {}]   ;;  %s737_s1 = inlined_call_operand.vmem [shape: bf16[128,128], index: 1, kind: input, shape index: {}]   ;;  %s738_s2 = inlined_call_operand.vmem [shape: f32[1,128], index: 2, kind: input, shape index: {}]   ;;  %s739_s3 = inlined_call_operand.vmem [shape: bf16[128,128], index: 3, kind: input, shape index: {}]   ;;  %s740_s4 = inlined_call_operand.vmem [shape: f32[1,128], index: 4, kind: input, shape index: {}]   ;;  %s741_s5 = inlined_call_operand.vmem [shape: bf16[128,128], index: 5, kind: input, shape index: {}]   ;;  %s742_s6 = inlined_call_operand.vmem [shape: f32[1,128], index: 6, kind: input, shape index: {}]   ;;  %s743_s7 = inlined_call_operand.hbm [shape: f32[16,128], index: 7, kind: output, shape index: {}]  }
   0x1   :  { %v516_v0 = vld [vmem:[%s737_s1] sm:$0xff]   ;;  %451 = vmatprep.subr.bf16.mxu0 %v565_v1  ;;  %471 = vmatprep.subr.bf16.mxu1 %v565_v1  ;;  %v517_v2 = vld [vmem:[%s737_s1 + $0x8] sm:$0xff]   ;;  %v518_v3 = vld [vmem:[%s737_s1 + $0x10] sm:$0xff]  }
   0x2   :  { %452 = vmatpush3.bf16.msra.mxu0 %v516_v0  ;;  %467 = vmatprep.mubr.msk.bf16.mxu0 %vm566_vm0, %v565_v1  ;;  %v525_v4 = vld [vmem:[%s739_s3] sm:$0xff]   ;;  %v519_v5 = vld [vmem:[%s737_s1 + $0x18] sm:$0xff]   ;;  %v526_v6 = vld [vmem:[%s739_s3 + $0x8] sm:$0xff]  }
   0x3   :  { %453 = vmatprep.subr.bf16.mxu0 %v565_v1  ;;  %487 = vmatprep.mubr.msk.bf16.mxu1 %vm566_vm0, %v565_v1  ;;  %v520_v7 = vld [vmem:[%s737_s1 + $0x20] sm:$0xff]   ;;  %v527_v8 = vld [vmem:[%s739_s3 + $0x10] sm:$0xff]   ;;  %v521_v9 = vld [vmem:[%s737_s1 + $0x28] sm:$0xff]  }
   0x4   :  { %472 = vmatpush3.bf16.msra.mxu1 %v525_v4  ;;  %v528_v10 = vld [vmem:[%s739_s3 + $0x18] sm:$0xff]   ;;  %v522_v11 = vld [vmem:[%s737_s1 + $0x30] sm:$0xff]  }
   0x5   :  { %473 = vmatprep.subr.bf16.mxu1 %v565_v1 }
   0x6   :  { %454 = vmatpush3.bf16.msra.mxu0 %v517_v2 }
   0x7   :  { %455 = vmatprep.subr.bf16.mxu0 %v565_v1 }
   0x8   :  { %474 = vmatpush3.bf16.msra.mxu1 %v526_v6 }
   0x9   :  { %475 = vmatprep.subr.bf16.mxu1 %v565_v1 }
   0xa   :  { %456 = vmatpush3.bf16.msra.mxu0 %v518_v3 }
   0xb   :  { %457 = vmatprep.subr.bf16.mxu0 %v565_v1 }
   0xc   :  { %476 = vmatpush3.bf16.msra.mxu1 %v527_v8 }
   0xd   :  { %477 = vmatprep.subr.bf16.mxu1 %v565_v1 }
   0xe   :  { %458 = vmatpush3.bf16.msra.mxu0 %v519_v5 }
   0xf   :  { %459 = vmatprep.subr.bf16.mxu0 %v565_v1 }
  0x12   :  { %460 = vmatpush3.bf16.msra.mxu0 %v520_v7 }
  0x13   :  { %461 = vmatprep.subr.bf16.mxu0 %v565_v1 }
  0x16   :  { %462 = vmatpush3.bf16.msra.mxu0 %v521_v9 }
  0x17   :  { %12 = vsyncpa [#allocation3], 0  ;;  %463 = vmatprep.subr.bf16.mxu0 %v565_v1  ;;  %478 = vmatpush3.bf16.msra.mxu1 %v528_v10  ;;  %v529_v12 = vld [vmem:[%s739_s3 + $0x20] sm:$0xff]   ;;  %v523_v13 = vld [vmem:[%s737_s1 + $0x38] sm:$0xff]  }
  0x18   :  { %479 = vmatprep.subr.bf16.mxu1 %v565_v1  ;;  %v530_v14 = vld [vmem:[%s739_s3 + $0x28] sm:$0xff]   ;;  %v524_v15 = vld [vmem:[%s736_s0] sm:$0xff]   ;;  %v531_v16 = vld [vmem:[%s739_s3 + $0x30] sm:$0xff]  }
  0x19   :  { %v532_v17 = vld [vmem:[%s739_s3 + $0x38] sm:$0xff]   ;;  %v533_v18 = vld [vmem:[%s741_s5] sm:$0xff]   ;;  %v534_v19 = vld [vmem:[%s741_s5 + $0x8] sm:$0xff]  }
  0x1a   :  { %464 = vmatpush3.bf16.msra.mxu0 %v522_v11  ;;  %v535_v20 = vld [vmem:[%s741_s5 + $0x10] sm:$0xff]   ;;  %v536_v21 = vld [vmem:[%s741_s5 + $0x18] sm:$0xff]   ;;  %v537_v22 = vld [vmem:[%s741_s5 + $0x20] sm:$0xff]  }
  0x1b   :  { %465 = vmatprep.subr.bf16.mxu0 %v565_v1  ;;  %480 = vmatpush3.bf16.msra.mxu1 %v529_v12  ;;  %v538_v23 = vld [vmem:[%s741_s5 + $0x28] sm:$0xff]   ;;  %v396_v24 = vld [vmem:[%s738_s2] ss:$0 sm:$0xff]  ;;  %v539_v34 = vld [vmem:[%s741_s5 + $0x30] sm:$0xff]  }
  0x1c   :  { %481 = vmatprep.subr.bf16.mxu1 %v565_v1  ;;  %v540_v35 = vld [vmem:[%s741_s5 + $0x38] sm:$0xff]   ;;  %v406_v36 = vld [vmem:[%s740_s4] ss:$0 sm:$0xff]  ;;  %s567_s5 = smov [#allocation2]  }
  0x1d   :  { %v415_v46 = vld [vmem:[%s742_s6] ss:$0 sm:$0xff]  ;;  %s385_s30 = sshll.u32 %s567_s5, 4  ;;  %s386_s30 = int_to_ptr.vmem [resolvable:$true] %s385_s30 }
  0x1e   :  { %466 = vmatpush3.bf16.msra.mxu0 %v523_v13  ;;  %s541_s4 = scalar_lea.vmem %s386_s30, 256  ;;  %p546_p1 = scmp.lt.s32.totalorder %s386_s30, %s386_s30 }
  0x1f   :  { %482 = vmatpush3.bf16.msra.mxu1 %v530_v14  ;;  %491 = vmatprep.subr.bf16.mxu0 %v565_v1  ;;  %p542_p0 = scmp.ne.s32.totalorder %s386_s30, %s541_s4  ;;  %p547_p2 = scmp.lt.s32.totalorder %s541_s4, %s541_s4 }
  0x20   :  { %483 = vmatprep.subr.bf16.mxu1 %v565_v1 }
  0x21   :  { %468 = vmatmul.mubr.bf16.vlgmr.msra.gmra.mrb[0].mxu0 %v524_v15  ;;  %p548_p3 = por %p547_p2, %p546_p1 }
  0x22   :  { %507 = vmatprep.mubr.msk.bf16.mxu0 %vm566_vm0, %v565_v1  ;;  %492 = vmatpush3.bf16.msra.mxu0 %v533_v18 }
  0x23   :  { %484 = vmatpush3.bf16.msra.mxu1 %v531_v16  ;;  %493 = vmatprep.subr.bf16.mxu0 %v565_v1  ;;  %p549_p4 = pnand %p548_p3, %p542_p0 }
  0x24   :  { %485 = vmatprep.subr.bf16.mxu1 %v565_v1 }
  0x26   :  { %494 = vmatpush3.bf16.msra.mxu0 %v534_v19 }
  0x27   :  { %486 = vmatpush3.bf16.msra.mxu1 %v532_v17  ;;  %495 = vmatprep.subr.bf16.mxu0 %v565_v1 }
  0x2a   :  { %496 = vmatpush3.bf16.msra.mxu0 %v535_v20 }
  0x2b   :  { %497 = vmatprep.subr.bf16.mxu0 %v565_v1 }
  0x2e   :  { %498 = vmatpush3.bf16.msra.mxu0 %v536_v21 }
  0x2f   :  { %499 = vmatprep.subr.bf16.mxu0 %v565_v1 }
  0x32   :  { %500 = vmatpush3.bf16.msra.mxu0 %v537_v22 }
  0x33   :  { %501 = vmatprep.subr.bf16.mxu0 %v565_v1 }
  0x36   :  { %502 = vmatpush3.bf16.msra.mxu0 %v538_v23 }
  0x37   :  { %503 = vmatprep.subr.bf16.mxu0 %v565_v1 }
  0x3a   :  { %504 = vmatpush3.bf16.msra.mxu0 %v539_v34 }
  0x3b   :  { %505 = vmatprep.subr.bf16.mxu0 %v565_v1 }
  0x3e   :  { %506 = vmatpush3.bf16.msra.mxu0 %v540_v35 }
  0xf4   :  { %v141_v25 = vpop.f32.mrb[0].mxu0 }
  0xf5   :  { %v142_v26 = vadd.f32 %v396_v24, %v141_v25  ;;  %v469_v27 = vpop.f32.mrb[1].mxu0 }
  0xf6   :  { %v144_v28 = vpop.f32.mrb[2].mxu0 }
  0xf7   :  { %v145_v29 = vadd.f32 %v396_v24, %v144_v28  ;;  %v470_v30 = vpop.f32.mrb[3].mxu0  ;;  %v148_v31 = vmax.f32 %v142_v26, 0.0 }
  0xf9   :  { %v149_v32 = vmax.f32 %v145_v29, 0.0 }
  0xfb   :  { %v150_v33 = vpack.c.bf16 %v149_v32, %v148_v31 }
  0xfd   :  { %488 = vmatmul.mubr.bf16.vlgmr.msra.gmra.mrb[0].mxu1 %v150_v33 }
 0x1d0   :  { %v256_v37 = vpop.f32.mrb[0].mxu1 }
 0x1d1   :  { %v257_v38 = vadd.f32 %v406_v36, %v256_v37  ;;  %v489_v39 = vpop.f32.mrb[1].mxu1 }
 0x1d2   :  { %v259_v40 = vpop.f32.mrb[2].mxu1 }
 0x1d3   :  { %v260_v41 = vadd.f32 %v406_v36, %v259_v40  ;;  %v490_v42 = vpop.f32.mrb[3].mxu1  ;;  %v263_v43 = vmax.f32 %v257_v38, 0.0 }
 0x1d5   :  { %v264_v44 = vmax.f32 %v260_v41, 0.0 }
 0x1d7   :  { %v265_v45 = vpack.c.bf16 %v264_v44, %v263_v43 }
 0x1d9   :  { %508 = vmatmul.mubr.bf16.vlgmr.msra.gmra.mrb[4].mxu0 %v265_v45 }
 0x2ac   :  { %v371_v47 = vpop.f32.mrb[4].mxu0 }
 0x2ad   :  { %v372_v48 = vadd.f32 %v415_v46, %v371_v47  ;;  %v509_v49 = vpop.f32.mrb[5].mxu0 }
 0x2ae   :  { %v374_v50 = vpop.f32.mrb[6].mxu0 }
 0x2af   :  { %378 = vst [vmem:[#allocation2] sm:$0xff] %v372_v48  ;;  %v375_v51 = vadd.f32 %v415_v46, %v374_v50  ;;  %v510_v52 = vpop.f32.mrb[7].mxu0 }
 0x2b1   :  { %379 = vst [vmem:[#allocation2 + $0x8] sm:$0xff] %v375_v51 }
 0x2b2   :  { %552 = shalt.err (!%p549_p4)
}
 0x2b3   :  { %s553_s8 = scalar_lea.hbm %s743_s7, 256 }
 0x2b4   :  { %p554_p5 = scmp.ne.s32.totalorder %s743_s7, %s553_s8  ;;  %p557_p6 = scmp.lt.u32.totalorder %s553_s8, %s743_s7 }
 0x2b6   :  { %p559_p7 = pnand %p557_p6, %p554_p5 }
 0x2b8   :  { %562 = shalt.err (!%p559_p7)
}
 0x2b9   :  { %s568_s12 = smov 128   ;;  %s569_s13 = smov 8  }
 0x2ba   :  { %391 = dma.vmem_to_hbm [thread:$0]  %s386_s30, 256, %s743_s7, [#allocation3], %s568_s12, %s568_s12, %s569_s13  }
 0x2bb   :  { %563 = dma.done.wait [#allocation3], 256  }
 0x2bc   :  { %564 = vsyncadd [#allocation3], 4294967040 }
 0x2bd   :  { %395 = vsyncpa [#allocation3], 1 }

</bundles_post_ra>
